<compile_context>
chip_gen: v7x
topology: tpu7x:2x2x1
jax: 0.10.0
libtpu: 0.0.40
codegen_flags: <defaults>
</compile_context>

<pallas_src>
import numpy as np
import jax
import jax.numpy as jnp
from jax.experimental import pallas as pl
from jax.experimental.pallas import tpu as pltpu


# ----------------------------------------------------------------------------
# Host-side construction of the constant pooling / interpolation operators
# ----------------------------------------------------------------------------
def avg_pool_matrix(size, k):
    """Rows select non-overlapping windows of size k with stride k (avg_pool2d, pad=0)."""
    out = (size - k) // k + 1
    m = np.zeros((out, size), dtype=np.float32)
    for i in range(out):
        m[i, i * k:i * k + k] = 1.0 / k
    return m


def bilinear_matrix(out_size, in_size):
    """Interpolation matrix for bilinear resize with align_corners=True (per axis)."""
    m = np.zeros((out_size, in_size), dtype=np.float32)
    for o in range(out_size):
        if in_size == 1 or out_size == 1:
            src = 0.0
        else:
            src = o * (in_size - 1) / (out_size - 1)
        lo = int(np.floor(src))
        hi = min(lo + 1, in_size - 1)
        f = src - lo
        m[o, lo] += 1.0 - f
        m[o, hi] += f
    return m


def _round_up(v, m):
    return ((v + m - 1) // m) * m


def build_packed_operators(H, W, pool_sizes, O, lane_pad=128):
    """[R1] Pack ALL pyramid levels into one pooled lane block.

    Returns:
      PT_cat (HW, Ppad):  pooled_all = x_rows @ PT_cat    (avg_pool2d, every level)
      UT_cat (Ppad, HW):  up_all     = y     @ UT_cat     (bilinear, align_corners=True)
      mask   (L*O, Ppad): 1 where an output row's own level's pooled columns live, else 0.
    Padded columns (>= sum of pooled sizes) have all-zero UT rows and are masked anyway.
    """
    HW = H * W
    levels = []
    total = 0
    for ps in pool_sizes:
        kh, kw = H // ps, W // ps          # matches int(h/pool_size) in the PyTorch module
        Ah = avg_pool_matrix(H, kh)        # (ph, H)
        Aw = avg_pool_matrix(W, kw)        # (pw, W)
        ph, pw = Ah.shape[0], Aw.shape[0]
        Uh = bilinear_matrix(H, ph)        # (H, ph)
        Uw = bilinear_matrix(W, pw)        # (W, pw)
        levels.append((Ah, Aw, Uh, Uw, ph * pw))
        total += ph * pw

    # [R10] keep the pooled lane width at 128 when it fits (1+4+16+64 = 85 <= 128 here).
    Ppad = max(lane_pad, _round_up(total, lane_pad))
    PT = np.zeros((HW, Ppad), np.float32)
    UT = np.zeros((Ppad, HW), np.float32)
    mask = np.zeros((len(pool_sizes) * O, Ppad), np.float32)
    off = 0
    for i, (Ah, Aw, Uh, Uw, P) in enumerate(levels):
        PT[:, off:off + P] = np.kron(Ah, Aw).T
        UT[off:off + P, :] = np.kron(Uh, Uw).T
        mask[i * O:(i + 1) * O, off:off + P] = 1.0
        off += P
    return PT, UT, mask, Ppad


def _pick_nb(N, C, C_total, HW, target_rows=128, vmem_budget_bytes=16 << 20):
    """[R3] Samples per grid step: fill the matmul M dim while keeping 8-row-aligned blocks."""
    nb_best = N  # whole-batch block equals the full array dims -> always BlockSpec-legal
    for nb in range(1, N + 1):
        if N % nb:
            continue
        aligned = (nb * C) % 8 == 0 and (nb * C_total) % 8 == 0
        fits = 2 * 4 * nb * (C + C_total) * HW <= vmem_budget_bytes  # double-buffered f32 in+out
        if aligned and fits:
            nb_best = nb
            if nb * C >= target_rows:
                break
    return nb_best


# ----------------------------------------------------------------------------
# Fused kernel: per grid step, NB samples; exactly three MXU matmuls.
# ----------------------------------------------------------------------------
def _make_fused_kernel(NB, C, LO, C_total, compute_dtype):
    def kernel(x_ref, pt_ref, w_ref, b_ref, m_ref, ut_ref, o_ref):
        x = x_ref[...]                                            # (NB*C, HW) f32
        xc = x.astype(compute_dtype)
        # [R1]+[R3] avg_pool2d for ALL levels & samples: one lane-dense matmul, M = NB*C.
        pooled = jnp.dot(xc, pt_ref[...],
                         preferred_element_type=jnp.float32)      # (NB*C, Ppad) f32
        # [R1]+[R3] all 1x1 convs (+folded BN) via the block-diagonal stacked weight.
        pre = jnp.dot(w_ref[...], pooled.astype(compute_dtype),
                      preferred_element_type=jnp.float32)         # (NB*LO, Ppad) f32
        # [R4] bias + ReLU in f32 on the VPU, then the 0/1 level mask (off-level and padded
        #      pooled columns must be zeroed before the shared upsample matmul).
        y = jnp.maximum(pre + b_ref[...], 0.0) * m_ref[...]
        # [R1] bilinear upsample for ALL levels: one matmul, lane-dense HW output.
        up = jnp.dot(y.astype(compute_dtype), ut_ref[...],
                     preferred_element_type=jnp.float32)          # (NB*LO, HW) f32
        # [R6] fused channel concat: two static slab stores per sample (identity rows + conv
        #      rows) instead of 1+L one-row masked stores.
        for n in range(NB):                                       # static unroll, NB is small
            r0 = n * C_total
            o_ref[r0:r0 + C, :] = x[n * C:(n + 1) * C, :].astype(o_ref.dtype)
            o_ref[r0 + C:r0 + C_total, :] = up[n * LO:(n + 1) * LO, :].astype(o_ref.dtype)

    return kernel


def pyramid_pooling_forward(x, params, pool_sizes,
                            compute_dtype=jnp.bfloat16,   # [R4] bf16 operands, f32 accumulation
                            out_dtype=jnp.float32):       # [R11] set bf16 to halve writeback
    """pyramidPooling.forward (model_name='pspnet', fusion_mode='cat', is_batchnorm=True)."""
    N, C, H, W = x.shape
    L = len(pool_sizes)
    O = params[0][0].shape[0]
    LO = L * O
    HW = H * W
    C_total = C + LO

    NB = _pick_nb(N, C, C_total, HW)
    steps = N // NB

    # Constant operators (built once on host).
    PT, UT, mask, Ppad = build_packed_operators(H, W, pool_sizes, O)
    W_cat = np.concatenate([np.asarray(p[0]) for p in params], axis=0)   # (L*O, C)
    b_cat = np.concatenate([np.asarray(p[1]) for p in params], axis=0)   # (L*O, 1)
    W_blk = np.kron(np.eye(NB, dtype=np.float32), W_cat)                 # (NB*L*O, NB*C) [R3]
    b_til = np.tile(b_cat, (NB, 1))                                      # (NB*L*O, 1)
    m_til = np.tile(mask, (NB, 1))                                       # (NB*L*O, Ppad)

    pt = jnp.asarray(PT, dtype=compute_dtype)
    ut = jnp.asarray(UT, dtype=compute_dtype)
    wb = jnp.asarray(W_blk, dtype=compute_dtype)
    bt = jnp.asarray(b_til, dtype=jnp.float32)     # bias/mask stay f32 (VPU path, v5e-safe)
    mt = jnp.asarray(m_til, dtype=jnp.float32)

    # [R3] free row-major HBM views: no in-kernel reshapes/transposes needed.
    x2 = x.reshape(N * C, HW)

    const2d = lambda g: (0, 0)
    in_specs = [
        pl.BlockSpec((NB * C, HW), lambda g: (g, 0)),
        # [R5] grid-invariant operators: constant index_map (re-fetch elided); after packing +
        # bf16 they total ~0.13 MiB, so default double-buffering is a negligible VMEM cost.
        # At production sizes switch these to pipeline_mode=pl.Buffered(1) or scratch DMA.
        pl.BlockSpec(pt.shape, const2d),
        pl.BlockSpec(wb.shape, const2d),
        pl.BlockSpec(bt.shape, const2d),
        pl.BlockSpec(mt.shape, const2d),
        pl.BlockSpec(ut.shape, const2d),
    ]

    # [R7]/[R8]: at this toy size steps == 1; for real batches steps = N/NB >= 4 restores
    # pipelining + megacore sharding, and PSPNet-scale C/HW additionally needs a grid axis
    # over output-channel groups / HW tiles to stay within v7x's 64 MiB VMEM.
    out2 = pl.pallas_call(
        _make_fused_kernel(NB, C, LO, C_total, compute_dtype),
        out_shape=jax.ShapeDtypeStruct((N * C_total, HW), out_dtype),
        grid=(steps,),
        in_specs=in_specs,
        out_specs=pl.BlockSpec((NB * C_total, HW), lambda g: (g, 0)),
        compiler_params=pltpu.CompilerParams(
            dimension_semantics=("parallel",),
            vmem_limit_bytes=64 * 1024 * 1024),    # [R9] explicit scoped-VMEM budget
    )(x2, pt, wb, bt, mt, ut)

    return out2.reshape(N, C_total, H, W)


# ----------------------------------------------------------------------------
# Parameter setup: 1x1 conv (no bias) + BN(gamma,beta,mean,var) folded (inference)
# ----------------------------------------------------------------------------
def init_params(key, in_channels, pool_sizes, eps=1e-5):
    O = int(in_channels / len(pool_sizes))
    params = []
    for _ in range(len(pool_sizes)):
        k1, k2, k3, key = jax.random.split(key, 4)
        w = 0.1 * jax.random.normal(k1, (O, in_channels), dtype=jnp.float32)  # conv weight (O, C)
        gamma = 1.0 + 0.1 * jax.random.normal(k2, (O,), dtype=jnp.float32)
        beta = 0.1 * jax.random.normal(k3, (O,), dtype=jnp.float32)
        running_mean = jnp.zeros((O,), jnp.float32)
        running_var = jnp.ones((O,), jnp.float32)
        scale = gamma / jnp.sqrt(running_var + eps)
        W_eff = w * scale[:, None]                      # (O, C)
        b_eff = (beta - running_mean * scale)[:, None]  # (O, 1)
        params.append((W_eff, b_eff))
    return params


# ----------------------------------------------------------------------------
# Pure-JAX reference (same math, no Pallas) for the numerical sanity check
# ----------------------------------------------------------------------------
def reference_forward(x, params, pool_sizes):
    N, C, H, W = x.shape
    outs = [x]
    for i, ps in enumerate(pool_sizes):
        kh, kw = H // ps, W // ps
        Ah = jnp.asarray(avg_pool_matrix(H, kh))
        Aw = jnp.asarray(avg_pool_matrix(W, kw))
        pooled = jnp.einsum('ih,nchw,jw->ncij', Ah, x, Aw)
        W_eff, b_eff = params[i]
        y = jnp.einsum('ncij,oc->noij', pooled, W_eff) + b_eff[None, :, :, None]
        y = jnp.maximum(y, 0.0)
        Uh = jnp.asarray(bilinear_matrix(H, pooled.shape[2]))
        Uw = jnp.asarray(bilinear_matrix(W, pooled.shape[3]))
        up = jnp.einsum('hi,noij,wj->nohw', Uh, y, Uw)
        outs.append(up)
    return jnp.concatenate(outs, axis=1)


if __name__ == "__main__":
    key = jax.random.PRNGKey(0)
    kx, kp = jax.random.split(key)

    N, C, H, W = 2, 4, 16, 16
    pool_sizes = (1, 2, 4, 8)

    x = jax.random.normal(kx, (N, C, H, W), dtype=jnp.float32)
    params = init_params(kp, C, pool_sizes)

    expected_channels = C + len(pool_sizes) * int(C / len(pool_sizes))
    ref = reference_forward(x, params, pool_sizes)

    # Exact path (f32 operands) against the f32 reference — tight tolerance.
    out_f32 = jax.block_until_ready(
        pyramid_pooling_forward(x, params, pool_sizes, compute_dtype=jnp.float32))
    assert out_f32.shape == (N, expected_channels, H, W), out_f32.shape
    np.testing.assert_allclose(np.asarray(out_f32), np.asarray(ref), rtol=2e-4, atol=2e-5)

    # Default fast path (bf16 operands, f32 accumulation) — loosened tolerance for bf16.
    out_bf16 = jax.block_until_ready(pyramid_pooling_forward(x, params, pool_sizes))
    assert out_bf16.shape == (N, expected_channels, H, W), out_bf16.shape
    np.testing.assert_allclose(np.asarray(out_bf16), np.asarray(ref), rtol=3e-2, atol=3e-2)

    print("KERNEL_OK")
</pallas_src>

<mosaic_0001>
module attributes {stable_mosaic.version = 11 : i64} {
  func.func @kernel(%arg0: i32, %arg1: memref<8x256xf32, #tpu.memory_space<vmem>>, %arg2: memref<256x128xf32, #tpu.memory_space<vmem>>, %arg3: memref<8x8xf32, #tpu.memory_space<vmem>>, %arg4: memref<8x1xf32, #tpu.memory_space<vmem>>, %arg5: memref<8x128xf32, #tpu.memory_space<vmem>>, %arg6: memref<128x256xf32, #tpu.memory_space<vmem>>, %arg7: memref<16x256xf32, #tpu.memory_space<vmem>>) attributes {dimension_semantics = [#tpu.dimension_semantics<parallel>], iteration_bounds = array<i64: 1>, scalar_prefetch = 0 : i64, scratch_operands = 0 : i64, tpu.core_type = #tpu.core_type<tc>, window_params = [{transform_indices = @transform_0, window_bounds = array<i64: 8, 256>}, {pipeline_mode = #tpu.pipeline_mode<synchronous>, transform_indices = @transform_1, window_bounds = array<i64: 256, 128>}, {pipeline_mode = #tpu.pipeline_mode<synchronous>, transform_indices = @transform_2, window_bounds = array<i64: 8, 8>}, {pipeline_mode = #tpu.pipeline_mode<synchronous>, transform_indices = @transform_3, window_bounds = array<i64: 8, 1>}, {pipeline_mode = #tpu.pipeline_mode<synchronous>, transform_indices = @transform_4, window_bounds = array<i64: 8, 128>}, {pipeline_mode = #tpu.pipeline_mode<synchronous>, transform_indices = @transform_5, window_bounds = array<i64: 128, 256>}, {transform_indices = @transform_6, window_bounds = array<i64: 16, 256>}]} {
    %c0 = arith.constant 0 : index
    %c0_0 = arith.constant 0 : index
    %0 = vector.load %arg1[%c0, %c0_0] : memref<8x256xf32, #tpu.memory_space<vmem>>, vector<8x256xf32>
    %c0_1 = arith.constant 0 : index
    %c0_2 = arith.constant 0 : index
    %1 = vector.load %arg2[%c0_1, %c0_2] : memref<256x128xf32, #tpu.memory_space<vmem>>, vector<256x128xf32>
    %cst = arith.constant dense<0.000000e+00> : vector<8x128xf32>
    %2 = tpu.matmul %0, %1, %cst {dimension_numbers = #tpu.dot_dimension_numbers<[1], [0], [0], [1], [0, 0, 1, 1], [], []>} : vector<8x256xf32>, vector<256x128xf32>, vector<8x128xf32> -> vector<8x128xf32>
    %c0_3 = arith.constant 0 : index
    %c0_4 = arith.constant 0 : index
    %3 = vector.load %arg3[%c0_3, %c0_4] : memref<8x8xf32, #tpu.memory_space<vmem>>, vector<8x8xf32>
    %cst_5 = arith.constant dense<0.000000e+00> : vector<8x128xf32>
    %4 = tpu.matmul %3, %2, %cst_5 {dimension_numbers = #tpu.dot_dimension_numbers<[1], [0], [0], [1], [0, 0, 1, 1], [], []>} : vector<8x8xf32>, vector<8x128xf32>, vector<8x128xf32> -> vector<8x128xf32>
    %c0_6 = arith.constant 0 : index
    %c0_7 = arith.constant 0 : index
    %5 = vector.load %arg4[%c0_6, %c0_7] : memref<8x1xf32, #tpu.memory_space<vmem>>, vector<8x1xf32>
    %6 = vector.broadcast %5 : vector<8x1xf32> to vector<8x128xf32>
    %7 = arith.addf %4, %6 : vector<8x128xf32>
    %cst_8 = arith.constant 0.000000e+00 : f32
    %8 = vector.broadcast %cst_8 : f32 to vector<8x128xf32>
    %9 = arith.maximumf %7, %8 : vector<8x128xf32>
    %c0_9 = arith.constant 0 : index
    %c0_10 = arith.constant 0 : index
    %10 = vector.load %arg5[%c0_9, %c0_10] : memref<8x128xf32, #tpu.memory_space<vmem>>, vector<8x128xf32>
    %11 = arith.mulf %9, %10 : vector<8x128xf32>
    %c0_11 = arith.constant 0 : index
    %c0_12 = arith.constant 0 : index
    %12 = vector.load %arg6[%c0_11, %c0_12] : memref<128x256xf32, #tpu.memory_space<vmem>>, vector<128x256xf32>
    %cst_13 = arith.constant dense<0.000000e+00> : vector<8x256xf32>
    %13 = tpu.matmul %11, %12, %cst_13 {dimension_numbers = #tpu.dot_dimension_numbers<[1], [0], [0], [1], [0, 0, 1, 1], [], []>} : vector<8x128xf32>, vector<128x256xf32>, vector<8x256xf32> -> vector<8x256xf32>
    %14 = vector.extract_strided_slice %0 {offsets = [0, 0], sizes = [4, 256], strides = [1, 1]} : vector<8x256xf32> to vector<4x256xf32>
    %c0_14 = arith.constant 0 : index
    %c0_15 = arith.constant 0 : index
    %15 = vector.load %arg7[%c0_14, %c0_15] : memref<16x256xf32, #tpu.memory_space<vmem>>, vector<4x256xf32>
    tpu.vector_store %arg7[%c0_14, %c0_15], %14 {strides = array<i32>} : memref<16x256xf32, #tpu.memory_space<vmem>>, vector<4x256xf32>,
    %16 = vector.extract_strided_slice %13 {offsets = [0, 0], sizes = [4, 256], strides = [1, 1]} : vector<8x256xf32> to vector<4x256xf32>
    %c4 = arith.constant 4 : index
    %c0_16 = arith.constant 0 : index
    %17 = vector.load %arg7[%c4, %c0_16] : memref<16x256xf32, #tpu.memory_space<vmem>>, vector<4x256xf32>
    tpu.vector_store %arg7[%c4, %c0_16], %16 {strides = array<i32>} : memref<16x256xf32, #tpu.memory_space<vmem>>, vector<4x256xf32>,
    %18 = vector.extract_strided_slice %0 {offsets = [4, 0], sizes = [4, 256], strides = [1, 1]} : vector<8x256xf32> to vector<4x256xf32>
    %c8 = arith.constant 8 : index
    %c0_17 = arith.constant 0 : index
    %19 = vector.load %arg7[%c8, %c0_17] : memref<16x256xf32, #tpu.memory_space<vmem>>, vector<4x256xf32>
    tpu.vector_store %arg7[%c8, %c0_17], %18 {strides = array<i32>} : memref<16x256xf32, #tpu.memory_space<vmem>>, vector<4x256xf32>,
    %20 = vector.extract_strided_slice %13 {offsets = [4, 0], sizes = [4, 256], strides = [1, 1]} : vector<8x256xf32> to vector<4x256xf32>
    %c12 = arith.constant 12 : index
    %c0_18 = arith.constant 0 : index
    %21 = vector.load %arg7[%c12, %c0_18] : memref<16x256xf32, #tpu.memory_space<vmem>>, vector<4x256xf32>
    tpu.vector_store %arg7[%c12, %c0_18], %20 {strides = array<i32>} : memref<16x256xf32, #tpu.memory_space<vmem>>, vector<4x256xf32>,
    return
  }
  func.func @transform_0(%arg0: i32) -> (i32, i32) {
    %c0_i32 = arith.constant 0 : i32
    %c0_i32_0 = arith.constant 0 : i32
    return %arg0, %c0_i32 : i32, i32
  }
  func.func @transform_1(%arg0: i32) -> (i32, i32) {
    %c0_i32 = arith.constant 0 : i32
    %c0_i32_0 = arith.constant 0 : i32
    %c0_i32_1 = arith.constant 0 : i32
    return %c0_i32, %c0_i32_0 : i32, i32
  }
  func.func @transform_2(%arg0: i32) -> (i32, i32) {
    %c0_i32 = arith.constant 0 : i32
    %c0_i32_0 = arith.constant 0 : i32
    %c0_i32_1 = arith.constant 0 : i32
    return %c0_i32, %c0_i32_0 : i32, i32
  }
  func.func @transform_3(%arg0: i32) -> (i32, i32) {
    %c0_i32 = arith.constant 0 : i32
    %c0_i32_0 = arith.constant 0 : i32
    %c0_i32_1 = arith.constant 0 : i32
    return %c0_i32, %c0_i32_0 : i32, i32
  }
  func.func @transform_4(%arg0: i32) -> (i32, i32) {
    %c0_i32 = arith.constant 0 : i32
    %c0_i32_0 = arith.constant 0 : i32
    %c0_i32_1 = arith.constant 0 : i32
    return %c0_i32, %c0_i32_0 : i32, i32
  }
  func.func @transform_5(%arg0: i32) -> (i32, i32) {
    %c0_i32 = arith.constant 0 : i32
    %c0_i32_0 = arith.constant 0 : i32
    %c0_i32_1 = arith.constant 0 : i32
    return %c0_i32, %c0_i32_0 : i32, i32
  }
  func.func @transform_6(%arg0: i32) -> (i32, i32) {
    %c0_i32 = arith.constant 0 : i32
    %c0_i32_0 = arith.constant 0 : i32
    return %arg0, %c0_i32 : i32, i32
  }
}

</mosaic_0001>

<bundles_post_ra>
// kernel: tpu_custom_call.1
= control target key start
LH: loop header
LB: loop body
LE: loop exit
PB: predicated region body
PF: predicated region fallthrough
CT: control target
= control target key end

     0   :  { %11 = vsyncpa [#allocation3], 0  ;;  %s854_s0 = inlined_call_operand.hbm [shape: f32[8,256], index: 0, kind: input, shape index: {}]   ;;  %s855_s1 = inlined_call_operand.hbm [shape: f32[256,128], index: 1, kind: input, shape index: {}]   ;;  %s856_s2 = inlined_call_operand.hbm [shape: f32[8,8], index: 2, kind: input, shape index: {}]   ;;  %s857_s3 = inlined_call_operand.hbm [shape: f32[8,1], index: 3, kind: input, shape index: {}]   ;;  %s858_s4 = inlined_call_operand.hbm [shape: f32[8,128], index: 4, kind: input, shape index: {}]   ;;  %s859_s5 = inlined_call_operand.hbm [shape: f32[128,256], index: 5, kind: input, shape index: {}]   ;;  %s860_s6 = inlined_call_operand.hbm [shape: f32[16,256], index: 6, kind: output, shape index: {}]  }
   0x1   :  { %12 = vsyncpa [#allocation6], 0 }
   0x2   :  { %13 = vsyncpa [#allocation9], 0 }
   0x3   :  { %14 = vsyncpa [#allocation12], 0 }
   0x4   :  { %15 = vsyncpa [#allocation4], 0  ;;  %s715_s21 = smov [#allocation5]   ;;  %s551_s25 = scalar_lea.hbm %s855_s1, 4096 }
   0x5   :  { %s31_s22 = sshll.u32 %s715_s21, 4  ;;  %p552_p0 = scmp.ne.s32.totalorder %s855_s1, %s551_s25  ;;  %s32_s22 = int_to_ptr.vmem [resolvable:$true] %s31_s22 }
   0x6   :  { %p555_p1 = scmp.lt.u32.totalorder %s551_s25, %s855_s1 }
   0x8   :  { %p557_p2 = pnand %p555_p1, %p552_p0 }
   0xa   :  { %560 = shalt.err (!%p557_p2)
}
   0xb   :  { %s561_s30 = scalar_lea.vmem %s32_s22, 4096  ;;  %p566_p4 = scmp.lt.s32.totalorder %s32_s22, %s32_s22 }
   0xc   :  { %p562_p3 = scmp.ne.s32.totalorder %s32_s22, %s561_s30  ;;  %p567_p5 = scmp.lt.s32.totalorder %s561_s30, %s561_s30 }
   0xe   :  { %p568_p6 = por %p567_p5, %p566_p4 }
  0x10   :  { %p569_p7 = pnand %p568_p6, %p562_p3 }
  0x12   :  { %572 = shalt.err (!%p569_p7)
}
  0x13   :  { %s716_s7 = smov 128   ;;  %s717_s8 = smov 8  }
  0x14   :  { %37 = dma.hbm_to_vmem [thread:$0]  %s855_s1, 4096, %s32_s22, [#allocation6], %s716_s7, %s716_s7, %s717_s8  }
  0x15   :  { %s718_s11 = smov [#allocation8]   ;;  %s719_s13 = smov [#allocation2]  }
  0x16   :  { %s54_s12 = sshll.u32 %s718_s11, 4  ;;  %s22_s14 = sshll.u32 %s719_s13, 4  ;;  %s55_s12 = int_to_ptr.vmem [resolvable:$true] %s54_s12  ;;  %s23_s14 = int_to_ptr.vmem [resolvable:$true] %s22_s14 }
  0x17   :  { %s573_s17 = scalar_lea.hbm %s857_s3, 128 }
  0x18   :  { %p574_p8 = scmp.ne.s32.totalorder %s857_s3, %s573_s17  ;;  %p577_p9 = scmp.lt.u32.totalorder %s573_s17, %s857_s3 }
  0x1a   :  { %p579_p10 = pnand %p577_p9, %p574_p8 }
  0x1c   :  { %582 = shalt.err (!%p579_p10)
}
  0x1d   :  { %s583_s1 = scalar_lea.vmem %s55_s12, 128  ;;  %p588_p12 = scmp.lt.s32.totalorder %s55_s12, %s55_s12 }
  0x1e   :  { %p584_p11 = scmp.ne.s32.totalorder %s55_s12, %s583_s1  ;;  %p589_p13 = scmp.lt.s32.totalorder %s583_s1, %s583_s1 }
  0x20   :  { %p590_p0 = por %p589_p13, %p588_p12 }
  0x22   :  { %p591_p1 = pnand %p590_p0, %p584_p11 }
  0x24   :  { %594 = shalt.err (!%p591_p1)
}
  0x25   :  { %57 = dma.hbm_to_vmem [thread:$0]  %s857_s3, 128, %s55_s12, [#allocation9]  }
  0x26   :  { %s595_s26 = scalar_lea.hbm %s854_s0, 256 }
  0x27   :  { %p596_p2 = scmp.ne.s32.totalorder %s854_s0, %s595_s26  ;;  %p599_p3 = scmp.lt.u32.totalorder %s595_s26, %s854_s0 }
  0x29   :  { %p601_p4 = pnand %p599_p3, %p596_p2 }
  0x2b   :  { %604 = shalt.err (!%p601_p4)
}
  0x2c   :  { %s605_s7 = scalar_lea.vmem %s23_s14, 256  ;;  %p610_p6 = scmp.lt.s32.totalorder %s23_s14, %s23_s14 }
  0x2d   :  { %p606_p5 = scmp.ne.s32.totalorder %s23_s14, %s605_s7  ;;  %p611_p7 = scmp.lt.s32.totalorder %s605_s7, %s605_s7 }
  0x2f   :  { %p612_p8 = por %p611_p7, %p610_p6 }
  0x31   :  { %p613_p9 = pnand %p612_p8, %p606_p5 }
  0x33   :  { %616 = shalt.err (!%p613_p9)
}
  0x34   :  { %25 = dma.hbm_to_vmem [thread:$0]  %s854_s0, 256, %s23_s14, [#allocation3]  }
  0x35   :  { %s720_s9 = smov [#allocation7]   ;;  %s721_s11 = smov [#allocation10]  }
  0x36   :  { %s44_s10 = sshll.u32 %s720_s9, 4  ;;  %s64_s12 = sshll.u32 %s721_s11, 4  ;;  %s45_s10 = int_to_ptr.vmem [resolvable:$true] %s44_s10  ;;  %s65_s12 = int_to_ptr.vmem [resolvable:$true] %s64_s12 }
  0x37   :  { %s617_s16 = scalar_lea.hbm %s856_s2, 128 }
  0x38   :  { %p618_p10 = scmp.ne.s32.totalorder %s856_s2, %s617_s16  ;;  %p621_p11 = scmp.lt.u32.totalorder %s617_s16, %s856_s2 }
  0x3a   :  { %p623_p12 = pnand %p621_p11, %p618_p10 }
  0x3c   :  { %626 = shalt.err (!%p623_p12)
}
  0x3d   :  { %s627_s0 = scalar_lea.vmem %s45_s10, 128  ;;  %p632_p0 = scmp.lt.s32.totalorder %s45_s10, %s45_s10 }
  0x3e   :  { %p628_p13 = scmp.ne.s32.totalorder %s45_s10, %s627_s0  ;;  %p633_p1 = scmp.lt.s32.totalorder %s627_s0, %s627_s0 }
  0x40   :  { %p634_p2 = por %p633_p1, %p632_p0 }
  0x42   :  { %p635_p3 = pnand %p634_p2, %p628_p13 }
  0x44   :  { %638 = shalt.err (!%p635_p3)
}
  0x45   :  { %47 = dma.hbm_to_vmem [thread:$0]  %s856_s2, 128, %s45_s10, [#allocation6]  }
  0x46   :  { %s639_s23 = scalar_lea.hbm %s858_s4, 128 }
  0x47   :  { %p640_p4 = scmp.ne.s32.totalorder %s858_s4, %s639_s23  ;;  %p643_p5 = scmp.lt.u32.totalorder %s639_s23, %s858_s4 }
  0x49   :  { %p645_p6 = pnand %p643_p5, %p640_p4 }
  0x4b   :  { %648 = shalt.err (!%p645_p6)
}
  0x4c   :  { %s649_s28 = scalar_lea.vmem %s65_s12, 128  ;;  %p654_p8 = scmp.lt.s32.totalorder %s65_s12, %s65_s12 }
  0x4d   :  { %p650_p7 = scmp.ne.s32.totalorder %s65_s12, %s649_s28  ;;  %p655_p9 = scmp.lt.s32.totalorder %s649_s28, %s649_s28 }
  0x4f   :  { %p656_p10 = por %p655_p9, %p654_p8 }
  0x51   :  { %p657_p11 = pnand %p656_p10, %p650_p7 }
  0x53   :  { %660 = shalt.err (!%p657_p11)
}
  0x54   :  { %67 = dma.hbm_to_vmem [thread:$0]  %s858_s4, 128, %s65_s12, [#allocation9]  }
  0x55   :  { %s722_s30 = smov [#allocation11]   ;;  %s661_s9 = scalar_lea.hbm %s859_s5, 4096 }
  0x56   :  { %s73_s7 = sshll.u32 %s722_s30, 4  ;;  %p662_p12 = scmp.ne.s32.totalorder %s859_s5, %s661_s9  ;;  %s74_s7 = int_to_ptr.vmem [resolvable:$true] %s73_s7 }
  0x57   :  { %p665_p13 = scmp.lt.u32.totalorder %s661_s9, %s859_s5 }
  0x59   :  { %p667_p0 = pnand %p665_p13, %p662_p12 }
  0x5b   :  { %670 = shalt.err (!%p667_p0)
}
  0x5c   :  { %s671_s16 = scalar_lea.vmem %s74_s7, 4096  ;;  %p676_p2 = scmp.lt.s32.totalorder %s74_s7, %s74_s7 }
  0x5d   :  { %p672_p1 = scmp.ne.s32.totalorder %s74_s7, %s671_s16  ;;  %p677_p3 = scmp.lt.s32.totalorder %s671_s16, %s671_s16 }
  0x5f   :  { %p678_p4 = por %p677_p3, %p676_p2 }
  0x61   :  { %p679_p5 = pnand %p678_p4, %p672_p1 }
  0x63   :  { %682 = shalt.err (!%p679_p5)
}
  0x64   :  { %s723_s4 = smov 256   ;;  %s724_s12 = smov 16  }
  0x65   :  { %79 = dma.hbm_to_vmem [thread:$0]  %s859_s5, 4096, %s74_s7, [#allocation12], %s723_s4, %s723_s4, %s724_s12  }
  0x66   :  { %705 = dma.done.wait [#allocation3], 256  }
  0x67   :  { %706 = vsyncadd [#allocation3], 4294967040 }
  0x68   :  { %707 = dma.done.wait [#allocation6], 4224  }
  0x69   :  { %708 = vsyncadd [#allocation6], 4294963072 }
  0x6a   :  { %709 = dma.done.wait [#allocation9], 256  }
  0x6b   :  { %710 = vsyncadd [#allocation9], 4294967040 }
  0x6c   :  { %711 = dma.done.wait [#allocation12], 4096  }
  0x6d   :  { %712 = vsyncadd [#allocation12], 4294963200  ;;  %v116_v0 = vld [vmem:[#allocation5 + $0x80] sm:$0xff]  ;;  %v117_v1 = vld [vmem:[#allocation5 + $0x88] sm:$0xff]  ;;  %v725_v52 = vmov 0.0   ;;  %vm726_vm0 = vmmov 0  }
  0x6e   :  { %v100_v2 = vld [vmem:[#allocation5] sm:$0xff]  ;;  %v472_v3 = vpack.c.bf16 %v117_v1, %v116_v0  ;;  %v101_v4 = vld [vmem:[#allocation5 + $0x8] sm:$0xff]  ;;  %v118_v5 = vld [vmem:[#allocation5 + $0x90] sm:$0xff]  ;;  %467 = vmatprep.subr.mxu1 %v725_v52  ;;  %469 = vmatprep.mubr.msk.f32.mxu1 %vm726_vm0, %v725_v52  ;;  %v727_v54 = vmov 0   ;;  %vm209_vm1 = vcmask 64512   ;;  %s728_s5 = smov [#allocation13]  }
  0x6f   :  { %v119_v6 = vld [vmem:[#allocation5 + $0x98] sm:$0xff]  ;;  %v474_v7 = vpack.c.bf16 %v101_v4, %v100_v2  ;;  %v102_v9 = vld [vmem:[#allocation5 + $0x10] sm:$0xff]  ;;  %v120_v11 = vld [vmem:[#allocation5 + $0xa0] sm:$0xff]  ;;  %550 = vset.pattern.permute.xlu0 %v727_v54  ;;  %s414_s19 = sshll.u32 %s728_s5, 4  ;;  %s415_s19 = int_to_ptr.vmem [resolvable:$true] %s414_s19 }
  0x70   :  { %v476_v8 = vpack.c.bf16 %v119_v6, %v118_v5  ;;  %v103_v10 = vld [vmem:[#allocation5 + $0x18] sm:$0xff]  ;;  %473 = vmatprep.subr.bf16.mxu0 %v472_v3  ;;  %v121_v12 = vld [vmem:[#allocation5 + $0xa8] sm:$0xff]  ;;  %v104_v15 = vld [vmem:[#allocation5 + $0x20] sm:$0xff]  ;;  %s683_s20 = scalar_lea.vmem %s415_s19, 512  ;;  %p688_p7 = scmp.lt.s32.totalorder %s415_s19, %s415_s19 }
  0x71   :  { %475 = vmatpush3.bf16.msra.mxu0 %v474_v7  ;;  %v478_v13 = vpack.c.bf16 %v103_v10, %v102_v9  ;;  %v480_v14 = vpack.c.bf16 %v121_v12, %v120_v11  ;;  %v105_v16 = vld [vmem:[#allocation5 + $0x28] sm:$0xff]  ;;  %v122_v17 = vld [vmem:[#allocation5 + $0xb0] sm:$0xff]  ;;  %v123_v18 = vld [vmem:[#allocation5 + $0xb8] sm:$0xff]  ;;  %p684_p6 = scmp.ne.s32.totalorder %s415_s19, %s683_s20  ;;  %p689_p8 = scmp.lt.s32.totalorder %s683_s20, %s683_s20 }
  0x72   :  { %477 = vmatprep.subr.bf16.mxu0 %v476_v8  ;;  %v482_v19 = vpack.c.bf16 %v105_v16, %v104_v15  ;;  %v484_v20 = vpack.c.bf16 %v123_v18, %v122_v17  ;;  %v106_v21 = vld [vmem:[#allocation5 + $0x30] sm:$0xff]  ;;  %v107_v22 = vld [vmem:[#allocation5 + $0x38] sm:$0xff]  ;;  %v124_v23 = vld [vmem:[#allocation5 + $0xc0] sm:$0xff] }
  0x73   :  { %v125_v24 = vld [vmem:[#allocation5 + $0xc8] sm:$0xff]  ;;  %v99_v25 = vld [vmem:[#allocation2 + $0x8] sm:$0xff]  ;;  %v98_v27 = vld [vmem:[#allocation2] sm:$0xff]  ;;  %v486_v28 = vpack.c.bf16 %v107_v22, %v106_v21  ;;  %p690_p9 = por %p689_p8, %p688_p7 }
  0x74   :  { %196 = vmatprep.mubr.f32.mxu0 %v99_v25  ;;  %390 = vst [vmem:[#allocation13 + $0x8] sm:$0xf] %v99_v25  ;;  %v402_v26 = vrot.slane %v99_v25, 4  ;;  %389 = vst [vmem:[#allocation13] sm:$0xf] %v98_v27  ;;  %v401_v29 = vrot.slane %v98_v27, 4  ;;  %v488_v30 = vpack.c.bf16 %v125_v24, %v124_v23 }
  0x75   :  { %479 = vmatpush3.bf16.msra.mxu0 %v478_v13  ;;  %v108_v31 = vld [vmem:[#allocation5 + $0x40] sm:$0xff]  ;;  %v109_v32 = vld [vmem:[#allocation5 + $0x48] sm:$0xff]  ;;  %v126_v33 = vld [vmem:[#allocation5 + $0xd0] sm:$0xff]  ;;  %p691_p10 = pnand %p690_p9, %p684_p6 }
  0x76   :  { %481 = vmatprep.subr.bf16.mxu0 %v480_v14  ;;  %406 = vst [vmem:[#allocation13 + $0x18] sm:$0xf] %v402_v26  ;;  %v127_v34 = vld [vmem:[#allocation5 + $0xd8] sm:$0xff]  ;;  %405 = vst [vmem:[#allocation13 + $0x10] sm:$0xf] %v401_v29  ;;  %v490_v35 = vpack.c.bf16 %v109_v32, %v108_v31  ;;  %v110_v37 = vld [vmem:[#allocation5 + $0x50] sm:$0xff] }
  0x77   :  { %v492_v36 = vpack.c.bf16 %v127_v34, %v126_v33  ;;  %v111_v38 = vld [vmem:[#allocation5 + $0x58] sm:$0xff]  ;;  %v128_v39 = vld [vmem:[#allocation5 + $0xe0] sm:$0xff]  ;;  %v129_v40 = vld [vmem:[#allocation5 + $0xe8] sm:$0xff] }
  0x78   :  { %v494_v41 = vpack.c.bf16 %v111_v38, %v110_v37  ;;  %v496_v42 = vpack.c.bf16 %v129_v40, %v128_v39  ;;  %v112_v43 = vld [vmem:[#allocation5 + $0x60] sm:$0xff]  ;;  %v113_v44 = vld [vmem:[#allocation5 + $0x68] sm:$0xff]  ;;  %v130_v45 = vld [vmem:[#allocation5 + $0xf0] sm:$0xff] }
  0x79   :  { %483 = vmatpush3.bf16.msra.mxu0 %v482_v19  ;;  %v131_v46 = vld [vmem:[#allocation5 + $0xf8] sm:$0xff]  ;;  %v498_v47 = vpack.c.bf16 %v113_v44, %v112_v43  ;;  %v114_v49 = vld [vmem:[#allocation5 + $0x70] sm:$0xff]  ;;  %v203_v53 = vld [vmem:[#allocation8] sm:$0xff] }
  0x7a   :  { %485 = vmatprep.subr.bf16.mxu0 %v484_v20  ;;  %v500_v48 = vpack.c.bf16 %v131_v46, %v130_v45  ;;  %v115_v50 = vld [vmem:[#allocation5 + $0x78] sm:$0xff]  ;;  %206 = vperm.xlu0 %550, %v203_v53   ;;  %v287_v55 = vld [vmem:[#allocation11 + $0x8] sm:$0xff]  ;;  %v289_v56 = vld [vmem:[#allocation11 + $0x18] sm:$0xff] }
  0x7b   :  { %v502_v51 = vpack.c.bf16 %v115_v50, %v114_v49  ;;  %v286_v57 = vld [vmem:[#allocation11] sm:$0xff]  ;;  %v288_v58 = vld [vmem:[#allocation11 + $0x10] sm:$0xff]  ;;  %v291_v60 = vld [vmem:[#allocation11 + $0x28] sm:$0xff]  ;;  %v504_v63 = vpack.c.bf16 %v289_v56, %v287_v55 }
  0x7c   :  { %v293_v61 = vld [vmem:[#allocation11 + $0x38] sm:$0xff]  ;;  %v202_v1 = vld [vmem:[#allocation7] sm:$0xff]  ;;  %v506_v2 = vpack.c.bf16 %v288_v58, %v286_v57  ;;  %v290_v4 = vld [vmem:[#allocation11 + $0x20] sm:$0xff] }
  0x7d   :  { %487 = vmatpush3.bf16.msra.mxu0 %v486_v28  ;;  %v508_v3 = vpack.c.bf16 %v293_v61, %v291_v60  ;;  %v292_v5 = vld [vmem:[#allocation11 + $0x30] sm:$0xff]  ;;  %v295_v6 = vld [vmem:[#allocation11 + $0x48] sm:$0xff]  ;;  %v297_v7 = vld [vmem:[#allocation11 + $0x58] sm:$0xff] }
  0x7e   :  { %489 = vmatprep.subr.bf16.mxu0 %v488_v30  ;;  %v510_v8 = vpack.c.bf16 %v292_v5, %v290_v4  ;;  %v512_v9 = vpack.c.bf16 %v297_v7, %v295_v6  ;;  %v294_v10 = vld [vmem:[#allocation11 + $0x40] sm:$0xff]  ;;  %v296_v11 = vld [vmem:[#allocation11 + $0x50] sm:$0xff]  ;;  %v299_v12 = vld [vmem:[#allocation11 + $0x68] sm:$0xff] }
  0x7f   :  { %v301_v13 = vld [vmem:[#allocation11 + $0x78] sm:$0xff]  ;;  %v514_v14 = vpack.c.bf16 %v296_v11, %v294_v10  ;;  %v298_v16 = vld [vmem:[#allocation11 + $0x60] sm:$0xff]  ;;  %v300_v17 = vld [vmem:[#allocation11 + $0x70] sm:$0xff] }
  0x80   :  { %v516_v15 = vpack.c.bf16 %v301_v13, %v299_v12  ;;  %v303_v18 = vld [vmem:[#allocation11 + $0x88] sm:$0xff]  ;;  %v305_v19 = vld [vmem:[#allocation11 + $0x98] sm:$0xff]  ;;  %v518_v20 = vpack.c.bf16 %v300_v17, %v298_v16  ;;  %v302_v22 = vld [vmem:[#allocation11 + $0x80] sm:$0xff] }
  0x81   :  { %491 = vmatpush3.bf16.msra.mxu0 %v490_v35  ;;  %v520_v21 = vpack.c.bf16 %v305_v19, %v303_v18  ;;  %v304_v23 = vld [vmem:[#allocation11 + $0x90] sm:$0xff]  ;;  %v307_v24 = vld [vmem:[#allocation11 + $0xa8] sm:$0xff]  ;;  %v309_v25 = vld [vmem:[#allocation11 + $0xb8] sm:$0xff] }
  0x82   :  { %493 = vmatprep.subr.bf16.mxu0 %v492_v36  ;;  %v522_v26 = vpack.c.bf16 %v304_v23, %v302_v22  ;;  %v306_v28 = vld [vmem:[#allocation11 + $0xa0] sm:$0xff]  ;;  %v308_v29 = vld [vmem:[#allocation11 + $0xb0] sm:$0xff]  ;;  %v311_v30 = vld [vmem:[#allocation11 + $0xc8] sm:$0xff] }
  0x83   :  { %v313_v31 = vld [vmem:[#allocation11 + $0xd8] sm:$0xff]  ;;  %v526_v32 = vpack.c.bf16 %v308_v29, %v306_v28  ;;  %v310_v34 = vld [vmem:[#allocation11 + $0xc0] sm:$0xff]  ;;  %v312_v35 = vld [vmem:[#allocation11 + $0xd0] sm:$0xff] }
  0x84   :  { %v528_v33 = vpack.c.bf16 %v313_v31, %v311_v30  ;;  %v530_v36 = vpack.c.bf16 %v312_v35, %v310_v34  ;;  %v315_v37 = vld [vmem:[#allocation11 + $0xe8] sm:$0xff]  ;;  %v317_v38 = vld [vmem:[#allocation11 + $0xf8] sm:$0xff]  ;;  %v314_v40 = vld [vmem:[#allocation11 + $0xe0] sm:$0xff] }
  0x85   :  { %495 = vmatpush3.bf16.msra.mxu0 %v494_v41  ;;  %v532_v39 = vpack.c.bf16 %v317_v38, %v315_v37  ;;  %v316_v41 = vld [vmem:[#allocation11 + $0xf0] sm:$0xff] }
  0x86   :  { %497 = vmatprep.subr.bf16.mxu0 %v496_v42  ;;  %v534_v42 = vpack.c.bf16 %v316_v41, %v314_v40 }
  0x89   :  { %499 = vmatpush3.bf16.msra.mxu0 %v498_v47  ;;  %v284_v47 = vld [vmem:[#allocation10] sm:$0xff] }
  0x8a   :  { %501 = vmatprep.subr.bf16.mxu0 %v500_v48 }
  0x8d   :  { %503 = vmatpush3.bf16.msra.mxu0 %v502_v51 }
  0x90   :  { %197 = vmatmul.mubr.f32.vlgmr.msra.gmra.mrb[0].mxu0 %v98_v27  ;;  %v524_v27 = vpack.c.bf16 %v309_v25, %v307_v24 }
  0xf9   :  { %v207_v43 = vpop.permute.xlu0 %206 }
 0x163   :  { %v462_v59 = vpop.f32.mrb[0].mxu0 }
 0x164   :  { %v463_v62 = vpop.f32.mrb[1].mxu0 }
 0x165   :  { %v464_v0 = vadd.f32 %v463_v62, %v462_v59 }
 0x167   :  { %468 = vmatpush3.msra.mxu1 %v464_v0 }
 0x168   :  { %470 = vmatmul.mubr.msk.f32.vlgmr.msra.gmra.mrb[0].mxu1 %vm209_vm1, %v202_v1  ;;  %505 = vmatprep.subr.bf16.mxu1 %v504_v63 }
 0x169   :  { %507 = vmatpush1.bf16.msra.mxu1 %v506_v2  ;;  %382 = vmatprep.mubr.f32.mxu1 %v725_v52 }
 0x16a   :  { %509 = vmatprep.subr.bf16.mxu1 %v508_v3 }
 0x16d   :  { %511 = vmatpush1.bf16.msra.mxu1 %v510_v8 }
 0x16e   :  { %513 = vmatprep.subr.bf16.mxu1 %v512_v9 }
 0x171   :  { %515 = vmatpush1.bf16.msra.mxu1 %v514_v14 }
 0x172   :  { %517 = vmatprep.subr.bf16.mxu1 %v516_v15 }
 0x175   :  { %519 = vmatpush1.bf16.msra.mxu1 %v518_v20 }
 0x176   :  { %521 = vmatprep.subr.bf16.mxu1 %v520_v21 }
 0x179   :  { %523 = vmatpush1.bf16.msra.mxu1 %v522_v26 }
 0x17a   :  { %525 = vmatprep.subr.bf16.mxu1 %v524_v27 }
 0x17d   :  { %527 = vmatpush1.bf16.msra.mxu1 %v526_v32 }
 0x17e   :  { %529 = vmatprep.subr.bf16.mxu1 %v528_v33 }
 0x181   :  { %531 = vmatpush1.bf16.msra.mxu1 %v530_v36 }
 0x182   :  { %533 = vmatprep.subr.bf16.mxu1 %v532_v39 }
 0x185   :  { %535 = vmatpush1.bf16.msra.mxu1 %v534_v42 }
 0x23b   :  { %v279_v44 = vpop.f32.mrb[0].mxu1 }
 0x23c   :  { %v280_v45 = vadd.f32 %v279_v44, %v207_v43  ;;  %v471_v46 = vpop.f32.mrb[1].mxu1 }
 0x23e   :  { %v283_v48 = vmax.f32 %v280_v45, 0.0 }
 0x240   :  { %v285_v49 = vmul.f32 %v284_v47, %v283_v48 }
 0x242   :  { %383 = vmatmul.mubr.f32.vlgmr.msra.gmra.mrb[2].mxu1 %v285_v49 }
 0x315   :  { %v384_v50 = vpop.f32.mrb[2].mxu1 }
 0x316   :  { %v393_v51 = vrot.slane %v384_v50, 4  ;;  %407 = vst [vmem:[#allocation13 + $0x10] sm:$0xf0] %v384_v50  ;;  %v386_v52 = vpop.f32.mrb[3].mxu1 }
 0x317   :  { %v394_v53 = vrot.slane %v386_v52, 4  ;;  %408 = vst [vmem:[#allocation13 + $0x18] sm:$0xf0] %v386_v52 }
 0x318   :  { %397 = vst [vmem:[#allocation13] sm:$0xf0] %v393_v51 }
 0x319   :  { %398 = vst [vmem:[#allocation13 + $0x8] sm:$0xf0] %v394_v53 }
 0x31a   :  { %694 = shalt.err (!%p691_p10)
}
 0x31b   :  { %s695_s21 = scalar_lea.hbm %s860_s6, 512 }
 0x31c   :  { %p696_p11 = scmp.ne.s32.totalorder %s860_s6, %s695_s21  ;;  %p699_p12 = scmp.lt.u32.totalorder %s695_s21, %s860_s6 }
 0x31e   :  { %p701_p13 = pnand %p699_p12, %p696_p11 }
 0x320   :  { %704 = shalt.err (!%p701_p13)
}
 0x321   :  { %420 = dma.vmem_to_hbm [thread:$0]  %s415_s19, 512, %s860_s6, [#allocation4], %s723_s4, %s723_s4, %s724_s12  }
 0x322   :  { %713 = dma.done.wait [#allocation4], 512  }
 0x323   :  { %714 = vsyncadd [#allocation4], 4294966784 }
 0x324   :  { %424 = vsyncpa [#allocation3], 1 }
 0x325   :  { %425 = vsyncpa [#allocation6], 1 }
 0x326   :  { %426 = vsyncpa [#allocation9], 1 }
 0x327   :  { %427 = vsyncpa [#allocation12], 1 }
 0x328   :  { %428 = vsyncpa [#allocation4], 1 }

</bundles_post_ra>
